<compile_context>
chip_gen: v5e
topology: v5e:2x2
jax: 0.10.0
libtpu: 0.0.40
codegen_flags: <defaults>
</compile_context>

<pallas_src>
import math

import jax
import jax.numpy as jnp
from jax import lax
from jax.experimental import pallas as pl
from jax.experimental.pallas import tpu as pltpu


def _round_up(x, m):
    return (x + m - 1) // m * m


def _pick_tile(s_pad, target=512):
    """Largest multiple-of-8 divisor of s_pad that is <= target."""
    best = 8
    for t in range(8, min(s_pad, target) + 1, 8):
        if s_pad % t == 0:
            best = t
    return best


def _make_preproc_kernel(s_pad, tile_s):
    n_groups = tile_s // 8

    def kernel(ids_ref, emb_ref, pe_ref, out_ref):
        # ids_ref: (B * s_pad,) int32 in SMEM (scalar prefetch, flattened)
        # emb_ref: (V, D)  VMEM-resident embedding table (constant block index)
        # pe_ref : (tile_s, D) positional-encoding tile for this S-tile
        # out_ref: (tile_s, D) output tile (leading batch dim squeezed)
        st = pl.program_id(0)
        b = pl.program_id(1)
        base = b * s_pad + st * tile_s

        def body(g, carry):
            row0 = pl.multiple_of(g * 8, 8)
            # Gather 8 embedding rows (per-row dynamic loads), pack into an
            # (8, D) slab so the PE add and the writeback store are dense,
            # unmasked full-vreg ops.
            rows = [
                emb_ref[pl.ds(ids_ref[base + row0 + j], 1), :] for j in range(8)
            ]
            gathered = jnp.concatenate(rows, axis=0)               # (8, D)
            slab = gathered.astype(jnp.float32) + pe_ref[pl.ds(row0, 8), :]
            out_ref[pl.ds(row0, 8), :] = slab.astype(out_ref.dtype)
            return carry

        lax.fori_loop(0, n_groups, body, 0, unroll=min(n_groups, 4))

    return kernel


def input_preprocessor(ids, emb_table, pos_enc, tile_s=None):
    """ids: (B, S) int32; emb_table: (V, D); pos_enc: (max_seq_len, D) f32.

    Returns emb_table[ids] + pos_enc[:S] with dtype = emb_table.dtype.
    (Pass a bf16 emb_table on v6e/v7x to halve residency + writeback; the add
    is done in f32.)
    """
    B, S = ids.shape
    V, D = emb_table.shape
    assert pos_enc.shape[0] >= S, "seq_len must not exceed max_seq_len"
    assert pos_enc.shape[1] == D

    itemsize = jnp.dtype(emb_table.dtype).itemsize
    table_bytes = V * D * itemsize
    # VMEM-resident-table path only.
    # TODO(synk): for tables that don't comfortably fit VMEM (v7x has 64 MiB/TC),
    # keep the table in HBM (memory_space=pl.ANY) and do a manual async-copy
    # row-gather with several DMAs in flight instead of full residency.
    assert table_bytes <= 48 * 1024 * 1024, (
        "embedding table too large for VMEM residency")

    # Pad S up to a multiple of 8 so every store is a sublane-aligned (8, D) slab
    # and the PE/output BlockSpecs satisfy the (8, 128) tiling constraint.
    s_pad = _round_up(S, 8)
    if tile_s is None:
        tile_s = _pick_tile(s_pad)
    assert tile_s % 8 == 0 and s_pad % tile_s == 0
    n_s_tiles = s_pad // tile_s

    ids_pad = ids.astype(jnp.int32)
    if s_pad != S:
        ids_pad = jnp.pad(ids_pad, ((0, 0), (0, s_pad - S)))  # pad with valid id 0
    # Flat 1-D id table: smallest SMEM padding. (Fine for realistic B*S; very
    # large B*S would want a per-tile SMEM block spec instead.)
    ids_flat = ids_pad.reshape(B * s_pad)

    pe = pos_enc.astype(jnp.float32)
    if pe.shape[0] >= s_pad:
        pe = pe[:s_pad]
    else:
        pe = jnp.pad(pe, ((0, s_pad - pe.shape[0]), (0, 0)))

    # HBM traffic only: ids + table (once) + PE rows + output writeback.
    bytes_accessed = (
        B * s_pad * 4 + table_bytes + s_pad * D * 4 + B * s_pad * D * itemsize
    )
    cost = pl.CostEstimate(
        flops=B * s_pad * D, transcendentals=0, bytes_accessed=bytes_accessed
    )

    pe_tile_bytes = tile_s * D * 4
    out_tile_bytes = tile_s * D * itemsize
    vmem_limit = int(
        min(
            64 * 1024 * 1024,
            max(
                16 * 1024 * 1024,
                table_bytes + 2 * (pe_tile_bytes + out_tile_bytes) + (4 << 20),
            ),
        )
    )

    kernel = _make_preproc_kernel(s_pad, tile_s)

    out = pl.pallas_call(
        kernel,
        out_shape=jax.ShapeDtypeStruct((B, s_pad, D), emb_table.dtype),
        grid_spec=pltpu.PrefetchScalarGridSpec(
            num_scalar_prefetch=1,          # token ids -> SMEM
            grid=(n_s_tiles, B),            # S-tiles outer, batch inner: the PE
                                            # block index is constant across B
            in_specs=[
                # Whole embedding table, constant block index -> DMA'd once,
                # kept resident, single-buffered (no wasted second buffer).
                pl.BlockSpec((V, D), lambda st, b, ids: (0, 0),
                             pipeline_mode=pl.Buffered(1)),
                # Positional-encoding tile for this S-tile (independent of b).
                pl.BlockSpec((tile_s, D), lambda st, b, ids: (st, 0)),
            ],
            # Batch dim squeezed out of the kernel view; (tile_s, D) is
            # sublane/lane-dense.
            out_specs=pl.BlockSpec((None, tile_s, D),
                                   lambda st, b, ids: (b, st, 0)),
        ),
        compiler_params=pltpu.CompilerParams(
            dimension_semantics=("parallel", "parallel"),
            vmem_limit_bytes=vmem_limit,
        ),
        cost_estimate=cost,
    )(ids_flat, emb_table, pe)

    if s_pad != S:
        out = out[:, :S, :]
    return out


def make_position_encoding(max_seq_len, d_model):
    """Matches InputPreprocessor._generate_position_encoding (without the
    leading batch dim, which is broadcast implicitly)."""
    position = jnp.arange(max_seq_len, dtype=jnp.float32)[:, None]
    div_term = jnp.exp(
        jnp.arange(0, d_model, 2, dtype=jnp.float32) * (-math.log(10000.0) / d_model)
    )
    pe = jnp.zeros((max_seq_len, d_model), dtype=jnp.float32)
    pe = pe.at[:, 0::2].set(jnp.sin(position * div_term))
    pe = pe.at[:, 1::2].set(jnp.cos(position * div_term))
    return pe


if __name__ == "__main__":
    # Small shapes consistent with the module (scaled down from
    # vocab=10000, d_model=512, max_seq_len=100, seq_len=50).
    # seq_len deliberately NOT a multiple of 8 to exercise the padding path
    # (matches the real config's S=50 situation).
    vocab_size = 128
    d_model = 128
    max_seq_len = 16
    seq_len = 12
    batch = 2

    key = jax.random.PRNGKey(0)
    k_emb, k_ids = jax.random.split(key)

    # nn.Embedding default init: N(0, 1)
    emb_table = jax.random.normal(k_emb, (vocab_size, d_model), dtype=jnp.float32)
    pos_enc = make_position_encoding(max_seq_len, d_model)

    ids = jax.random.randint(k_ids, (batch, seq_len), 0, vocab_size, dtype=jnp.int32)

    out = input_preprocessor(ids, emb_table, pos_enc)
    out = jax.block_until_ready(out)

    # Reference (plain JAX) check of the forward semantics:
    ref = emb_table[ids] + pos_enc[:seq_len][None, :, :]
    assert out.shape == (batch, seq_len, d_model)
    assert out.dtype == jnp.float32
    assert jnp.allclose(out, ref, atol=1e-6, rtol=1e-6)

    print("KERNEL_OK")
</pallas_src>

<mosaic_0001>
module attributes {stable_mosaic.version = 11 : i64} {
  func.func @kernel(%arg0: i32, %arg1: i32, %arg2: memref<32xi32, #tpu.memory_space<smem>>, %arg3: memref<128x128xf32, #tpu.memory_space<vmem>>, %arg4: memref<16x128xf32, #tpu.memory_space<vmem>>, %arg5: memref<1x16x128xf32, #tpu.memory_space<vmem>>) attributes {dimension_semantics = [#tpu.dimension_semantics<parallel>, #tpu.dimension_semantics<parallel>], iteration_bounds = array<i64: 1, 2>, scalar_prefetch = 1 : i64, scratch_operands = 0 : i64, tpu.core_type = #tpu.core_type<tc>, window_params = [{pipeline_mode = #tpu.pipeline_mode<synchronous>, transform_indices = @transform_0, window_bounds = array<i64: 128, 128>}, {transform_indices = @transform_1, window_bounds = array<i64: 16, 128>}, {transform_indices = @transform_2, window_bounds = array<i64: 1, 16, 128>}]} {
    %c16_i32 = arith.constant 16 : i32
    %0 = arith.muli %arg1, %c16_i32 : i32
    %c16_i32_0 = arith.constant 16 : i32
    %1 = arith.muli %arg0, %c16_i32_0 : i32
    %2 = arith.addi %0, %1 : i32
    %c0_i32 = arith.constant 0 : i32
    %c8_i32 = arith.constant 8 : i32
    %3 = arith.muli %c0_i32, %c8_i32 : i32
    %4 = tpu.assume_multiple %3, 8 : i32
    %5 = arith.addi %2, %4 : i32
    %c0_i32_1 = arith.constant 0 : i32
    %6 = arith.addi %5, %c0_i32_1 : i32
    %7 = arith.index_cast %6 : i32 to index
    %8 = memref.load %arg2[%7] : memref<32xi32, #tpu.memory_space<smem>>
    %9 = arith.index_cast %8 : i32 to index
    %c0 = arith.constant 0 : index
    %10 = vector.load %arg3[%9, %c0] : memref<128x128xf32, #tpu.memory_space<vmem>>, vector<1x128xf32>
    %11 = arith.addi %2, %4 : i32
    %c1_i32 = arith.constant 1 : i32
    %12 = arith.addi %11, %c1_i32 : i32
    %13 = arith.index_cast %12 : i32 to index
    %14 = memref.load %arg2[%13] : memref<32xi32, #tpu.memory_space<smem>>
    %15 = arith.index_cast %14 : i32 to index
    %c0_2 = arith.constant 0 : index
    %16 = vector.load %arg3[%15, %c0_2] : memref<128x128xf32, #tpu.memory_space<vmem>>, vector<1x128xf32>
    %17 = arith.addi %2, %4 : i32
    %c2_i32 = arith.constant 2 : i32
    %18 = arith.addi %17, %c2_i32 : i32
    %19 = arith.index_cast %18 : i32 to index
    %20 = memref.load %arg2[%19] : memref<32xi32, #tpu.memory_space<smem>>
    %21 = arith.index_cast %20 : i32 to index
    %c0_3 = arith.constant 0 : index
    %22 = vector.load %arg3[%21, %c0_3] : memref<128x128xf32, #tpu.memory_space<vmem>>, vector<1x128xf32>
    %23 = arith.addi %2, %4 : i32
    %c3_i32 = arith.constant 3 : i32
    %24 = arith.addi %23, %c3_i32 : i32
    %25 = arith.index_cast %24 : i32 to index
    %26 = memref.load %arg2[%25] : memref<32xi32, #tpu.memory_space<smem>>
    %27 = arith.index_cast %26 : i32 to index
    %c0_4 = arith.constant 0 : index
    %28 = vector.load %arg3[%27, %c0_4] : memref<128x128xf32, #tpu.memory_space<vmem>>, vector<1x128xf32>
    %29 = arith.addi %2, %4 : i32
    %c4_i32 = arith.constant 4 : i32
    %30 = arith.addi %29, %c4_i32 : i32
    %31 = arith.index_cast %30 : i32 to index
    %32 = memref.load %arg2[%31] : memref<32xi32, #tpu.memory_space<smem>>
    %33 = arith.index_cast %32 : i32 to index
    %c0_5 = arith.constant 0 : index
    %34 = vector.load %arg3[%33, %c0_5] : memref<128x128xf32, #tpu.memory_space<vmem>>, vector<1x128xf32>
    %35 = arith.addi %2, %4 : i32
    %c5_i32 = arith.constant 5 : i32
    %36 = arith.addi %35, %c5_i32 : i32
    %37 = arith.index_cast %36 : i32 to index
    %38 = memref.load %arg2[%37] : memref<32xi32, #tpu.memory_space<smem>>
    %39 = arith.index_cast %38 : i32 to index
    %c0_6 = arith.constant 0 : index
    %40 = vector.load %arg3[%39, %c0_6] : memref<128x128xf32, #tpu.memory_space<vmem>>, vector<1x128xf32>
    %41 = arith.addi %2, %4 : i32
    %c6_i32 = arith.constant 6 : i32
    %42 = arith.addi %41, %c6_i32 : i32
    %43 = arith.index_cast %42 : i32 to index
    %44 = memref.load %arg2[%43] : memref<32xi32, #tpu.memory_space<smem>>
    %45 = arith.index_cast %44 : i32 to index
    %c0_7 = arith.constant 0 : index
    %46 = vector.load %arg3[%45, %c0_7] : memref<128x128xf32, #tpu.memory_space<vmem>>, vector<1x128xf32>
    %47 = arith.addi %2, %4 : i32
    %c7_i32 = arith.constant 7 : i32
    %48 = arith.addi %47, %c7_i32 : i32
    %49 = arith.index_cast %48 : i32 to index
    %50 = memref.load %arg2[%49] : memref<32xi32, #tpu.memory_space<smem>>
    %51 = arith.index_cast %50 : i32 to index
    %c0_8 = arith.constant 0 : index
    %52 = vector.load %arg3[%51, %c0_8] : memref<128x128xf32, #tpu.memory_space<vmem>>, vector<1x128xf32>
    %53 = tpu.concatenate %10, %16, %22, %28, %34, %40, %46, %52 in 0 : vector<1x128xf32>, vector<1x128xf32>, vector<1x128xf32>, vector<1x128xf32>, vector<1x128xf32>, vector<1x128xf32>, vector<1x128xf32>, vector<1x128xf32> -> vector<8x128xf32>
    %54 = arith.index_cast %4 : i32 to index
    %c0_9 = arith.constant 0 : index
    %55 = vector.load %arg4[%54, %c0_9] : memref<16x128xf32, #tpu.memory_space<vmem>>, vector<8x128xf32>
    %56 = arith.addf %53, %55 : vector<8x128xf32>
    %c0_10 = arith.constant 0 : index
    %57 = arith.index_cast %4 : i32 to index
    %c0_11 = arith.constant 0 : index
    %58 = vector.load %arg5[%c0_10, %57, %c0_11] : memref<1x16x128xf32, #tpu.memory_space<vmem>>, vector<1x8x128xf32>
    %59 = vector.shape_cast %58 : vector<1x8x128xf32> to vector<8x128xf32>
    %60 = vector.shape_cast %56 : vector<8x128xf32> to vector<1x8x128xf32>
    tpu.vector_store %arg5[%c0_10, %57, %c0_11], %60 {strides = array<i32>} : memref<1x16x128xf32, #tpu.memory_space<vmem>>, vector<1x8x128xf32>,
    %c1_i32_12 = arith.constant 1 : i32
    %c8_i32_13 = arith.constant 8 : i32
    %61 = arith.muli %c1_i32_12, %c8_i32_13 : i32
    %62 = tpu.assume_multiple %61, 8 : i32
    %63 = arith.addi %2, %62 : i32
    %c0_i32_14 = arith.constant 0 : i32
    %64 = arith.addi %63, %c0_i32_14 : i32
    %65 = arith.index_cast %64 : i32 to index
    %66 = memref.load %arg2[%65] : memref<32xi32, #tpu.memory_space<smem>>
    %67 = arith.index_cast %66 : i32 to index
    %c0_15 = arith.constant 0 : index
    %68 = vector.load %arg3[%67, %c0_15] : memref<128x128xf32, #tpu.memory_space<vmem>>, vector<1x128xf32>
    %69 = arith.addi %2, %62 : i32
    %c1_i32_16 = arith.constant 1 : i32
    %70 = arith.addi %69, %c1_i32_16 : i32
    %71 = arith.index_cast %70 : i32 to index
    %72 = memref.load %arg2[%71] : memref<32xi32, #tpu.memory_space<smem>>
    %73 = arith.index_cast %72 : i32 to index
    %c0_17 = arith.constant 0 : index
    %74 = vector.load %arg3[%73, %c0_17] : memref<128x128xf32, #tpu.memory_space<vmem>>, vector<1x128xf32>
    %75 = arith.addi %2, %62 : i32
    %c2_i32_18 = arith.constant 2 : i32
    %76 = arith.addi %75, %c2_i32_18 : i32
    %77 = arith.index_cast %76 : i32 to index
    %78 = memref.load %arg2[%77] : memref<32xi32, #tpu.memory_space<smem>>
    %79 = arith.index_cast %78 : i32 to index
    %c0_19 = arith.constant 0 : index
    %80 = vector.load %arg3[%79, %c0_19] : memref<128x128xf32, #tpu.memory_space<vmem>>, vector<1x128xf32>
    %81 = arith.addi %2, %62 : i32
    %c3_i32_20 = arith.constant 3 : i32
    %82 = arith.addi %81, %c3_i32_20 : i32
    %83 = arith.index_cast %82 : i32 to index
    %84 = memref.load %arg2[%83] : memref<32xi32, #tpu.memory_space<smem>>
    %85 = arith.index_cast %84 : i32 to index
    %c0_21 = arith.constant 0 : index
    %86 = vector.load %arg3[%85, %c0_21] : memref<128x128xf32, #tpu.memory_space<vmem>>, vector<1x128xf32>
    %87 = arith.addi %2, %62 : i32
    %c4_i32_22 = arith.constant 4 : i32
    %88 = arith.addi %87, %c4_i32_22 : i32
    %89 = arith.index_cast %88 : i32 to index
    %90 = memref.load %arg2[%89] : memref<32xi32, #tpu.memory_space<smem>>
    %91 = arith.index_cast %90 : i32 to index
    %c0_23 = arith.constant 0 : index
    %92 = vector.load %arg3[%91, %c0_23] : memref<128x128xf32, #tpu.memory_space<vmem>>, vector<1x128xf32>
    %93 = arith.addi %2, %62 : i32
    %c5_i32_24 = arith.constant 5 : i32
    %94 = arith.addi %93, %c5_i32_24 : i32
    %95 = arith.index_cast %94 : i32 to index
    %96 = memref.load %arg2[%95] : memref<32xi32, #tpu.memory_space<smem>>
    %97 = arith.index_cast %96 : i32 to index
    %c0_25 = arith.constant 0 : index
    %98 = vector.load %arg3[%97, %c0_25] : memref<128x128xf32, #tpu.memory_space<vmem>>, vector<1x128xf32>
    %99 = arith.addi %2, %62 : i32
    %c6_i32_26 = arith.constant 6 : i32
    %100 = arith.addi %99, %c6_i32_26 : i32
    %101 = arith.index_cast %100 : i32 to index
    %102 = memref.load %arg2[%101] : memref<32xi32, #tpu.memory_space<smem>>
    %103 = arith.index_cast %102 : i32 to index
    %c0_27 = arith.constant 0 : index
    %104 = vector.load %arg3[%103, %c0_27] : memref<128x128xf32, #tpu.memory_space<vmem>>, vector<1x128xf32>
    %105 = arith.addi %2, %62 : i32
    %c7_i32_28 = arith.constant 7 : i32
    %106 = arith.addi %105, %c7_i32_28 : i32
    %107 = arith.index_cast %106 : i32 to index
    %108 = memref.load %arg2[%107] : memref<32xi32, #tpu.memory_space<smem>>
    %109 = arith.index_cast %108 : i32 to index
    %c0_29 = arith.constant 0 : index
    %110 = vector.load %arg3[%109, %c0_29] : memref<128x128xf32, #tpu.memory_space<vmem>>, vector<1x128xf32>
    %111 = tpu.concatenate %68, %74, %80, %86, %92, %98, %104, %110 in 0 : vector<1x128xf32>, vector<1x128xf32>, vector<1x128xf32>, vector<1x128xf32>, vector<1x128xf32>, vector<1x128xf32>, vector<1x128xf32>, vector<1x128xf32> -> vector<8x128xf32>
    %112 = arith.index_cast %62 : i32 to index
    %c0_30 = arith.constant 0 : index
    %113 = vector.load %arg4[%112, %c0_30] : memref<16x128xf32, #tpu.memory_space<vmem>>, vector<8x128xf32>
    %114 = arith.addf %111, %113 : vector<8x128xf32>
    %c0_31 = arith.constant 0 : index
    %115 = arith.index_cast %62 : i32 to index
    %c0_32 = arith.constant 0 : index
    %116 = vector.load %arg5[%c0_31, %115, %c0_32] : memref<1x16x128xf32, #tpu.memory_space<vmem>>, vector<1x8x128xf32>
    %117 = vector.shape_cast %116 : vector<1x8x128xf32> to vector<8x128xf32>
    %118 = vector.shape_cast %114 : vector<8x128xf32> to vector<1x8x128xf32>
    tpu.vector_store %arg5[%c0_31, %115, %c0_32], %118 {strides = array<i32>} : memref<1x16x128xf32, #tpu.memory_space<vmem>>, vector<1x8x128xf32>,
    %c2_i32_33 = arith.constant 2 : i32
    return
  }
  func.func @transform_0(%arg0: i32, %arg1: i32, %arg2: memref<32xi32, #tpu.memory_space<smem>>) -> (i32, i32) {
    %c0_i32 = arith.constant 0 : i32
    %c0_i32_0 = arith.constant 0 : i32
    %c0_i32_1 = arith.constant 0 : i32
    return %c0_i32, %c0_i32_0 : i32, i32
  }
  func.func @transform_1(%arg0: i32, %arg1: i32, %arg2: memref<32xi32, #tpu.memory_space<smem>>) -> (i32, i32) {
    %c0_i32 = arith.constant 0 : i32
    %c0_i32_0 = arith.constant 0 : i32
    return %arg0, %c0_i32 : i32, i32
  }
  func.func @transform_2(%arg0: i32, %arg1: i32, %arg2: memref<32xi32, #tpu.memory_space<smem>>) -> (i32, i32, i32) {
    %c0_i32 = arith.constant 0 : i32
    %c0_i32_0 = arith.constant 0 : i32
    return %arg1, %arg0, %c0_i32 : i32, i32, i32
  }
}

</mosaic_0001>

<bundles_post_ra>
// kernel: tpu_custom_call.1
= control target key start
LH: loop header
LB: loop body
LE: loop exit
PB: predicated region body
PF: predicated region fallthrough
CT: control target
= control target key end

     0   :  { %s706_s15 = smov [#allocation3]   ;;  %s916_s0 = inlined_call_operand.hbm [shape: s32[32], index: 0, kind: input, shape index: {}]   ;;  %s917_s1 = inlined_call_operand.hbm [shape: f32[128,128], index: 1, kind: input, shape index: {}]   ;;  %s918_s2 = inlined_call_operand.hbm [shape: f32[16,128], index: 2, kind: input, shape index: {}]   ;;  %s919_s3 = inlined_call_operand.hbm [shape: f32[2,16,128], index: 3, kind: output, shape index: {}]  }
   0x1   :  { %s9_s14 = sshll.u32 %s916_s0, 4  ;;  %s10_s14 = int_to_ptr.hbm [resolvable:$true] %s9_s14 }
   0x2   :  { %12 = dma.hbm_to_smem %s10_s14, 16, %s706_s15, [#allocation2] }
   0x3   :  { %668 = dma.done.wait [#allocation2], 16 }
   0x4   :  { %669 = vsyncadd [#allocation2], 4294967280 }
   0x5   :  { %15 = sfence }
   0x6   :  { %16 = vsyncpa [#allocation5], 0 }
   0x7   :  { %17 = vsyncpa [#allocation8], 0 }
   0x8   :  { %18 = vsyncpa [#allocation6], 0 }
   0x9   :  { %20 = vsyncpa [#allocation6 + $0x1], 0  ;;  %s736_s16 = smov 0   ;;  %s738_s17 = smov 0  }
   0xa   :  { %s740_s18 = smov 0   ;;  %s742_s19 = smov 0  }
   0xb   :  { %s744_s20 = smov 0   ;;  %s746_s0 = smov 0  }
   0xc LB: > { %s446_s21 = sadd.s32 4294967295, %s704_s0   ;;  %s447_s22 = sadd.s32 4294967294, %s704_s0   ;;  %s704_s0 = sphi %s746_s0, %s26_s0   ;;  %s700_s20 = sphi %s744_s20, %s930_s20   ;;  %s696_s19 = sphi %s742_s19, %s929_s19   ;;  %s692_s18 = sphi %s740_s18, %s928_s18   ;;  %s688_s17 = sphi %s738_s17, %s927_s17   ;;  %s684_s16 = sphi %s736_s16, %s926_s16  }
   0xd   : > { %s35_s23 = sadd.s32 1, %s700_s20  ;;  %s94_s24 = sadd.s32 1, %s692_s18 }
   0xe   : > { %p36_p0 = scmp.ge.s32.totalorder %s35_s23, 2  ;;  %p104_p1 = scmp.ne.s32.totalorder %s692_s18, %s688_s17 }
   0xf   : > { %p105_p2 = scmp.eq.s32.totalorder %s446_s21, 1  ;;  %p110_p3 = scmp.ne.s32.totalorder %s688_s17, %s684_s16 }
  0x10   : > { %s932_s23 = smov (%p36_p0, %s35_s23), 0  ;;  %p111_p5 = scmp.eq.s32.totalorder %s447_s22, 1 }
  0x11   : > { %p776_p4 = por %p105_p2, %p104_p1  ;;  %s89_s26 = ssub.s32 %s700_s20, %s932_s23 }
  0x12   : > { %p448_p6 = scmp.ge.s32.totalorder %s704_s0, 1  ;;  %p92_p7 = scmp.eq.s32.totalorder %s89_s26, 0 }
  0x13   : > { %p783_p8 = por %p111_p5, %p110_p3  ;;  %p118_p9 = scmp.lt.s32.totalorder %s704_s0, 3 }
  0x14   : > { %s789_s28 = scalar_select %p92_p7, %s692_s18, %s94_s24  }
  0x15   : > { %p791_p10 = pnand %p448_p6, %p118_p9  ;;  %p795_p11 = scmp.eq.s32.totalorder %s446_s21, 0 }
  0x16   : > { %s129_s6 = sshll.u32 %s917_s1, 4  ;;  %s707_s7 = smov [#allocation4]   ;;  %s130_s6 = int_to_ptr.hbm [resolvable:$true] %s129_s6 }
  0x17   : > { %p473_p12 = pneg %p791_p10  ;;  %s131_s8 = sshll.u32 %s707_s7, 4  ;;  %s132_s8 = int_to_ptr.vmem [resolvable:$true] %s131_s8 }
  0x18   : > { %s146_s11 = sshll.u32 %s918_s2, 4  ;;  %s708_s12 = smov 128   ;;  %s147_s11 = int_to_ptr.hbm [resolvable:$true] %s146_s11 }
  0x19   : > { %p474_p13 = pnand %p795_p11, %p473_p12  ;;  %s709_s13 = smov 8  }
  0x1a   : > { %s710_s14 = smov [#allocation7]   ;;  %164 = sbr.rel (%p791_p10) target bundleno = 74 (0x4a), region = 28 }
  0x1b   : > { %476 = dma.hbm_to_vmem [thread:$0]  (!%p474_p13), %s130_s6, 2048, %s132_s8, [#allocation5], %s708_s12, %s708_s12, %s709_s13  }
  0x1c   : > { %s148_s15 = sshll.u32 %s710_s14, 4  ;;  %s149_s15 = int_to_ptr.vmem [resolvable:$true] %s148_s15 }
  0x1d   : > { %479 = dma.hbm_to_vmem [thread:$0]  (!%p474_p13), %s147_s11, 256, %s149_s15, [#allocation8], %s708_s12, %s708_s12, %s709_s13  }
  0x1f   : > { %671 = dma.done.wait (%p795_p11), [#allocation5], 2048  }
  0x20   : > { %673 = vsyncadd (%p795_p11), [#allocation5], 4294965248 }
  0x21   : > { %675 = dma.done.wait (%p795_p11), [#allocation8], 256  }
  0x22   : > { %677 = vsyncadd (%p795_p11), [#allocation8], 4294967040  ;;  %s820_s21 = sshll.u32 %s696_s19, 4  ;;  %s920_s24 = sand.u32 1, %s688_s17   ;;  %vm245_vm0 = vcmask 1040384   ;;  %vm247_vm1 = vcmask 1041408  }
  0x23   : > { %s193_s22 = sld [smem:[#allocation3 + %s820_s21]]  ;;  %s196_s26 = sadd.s32 1, %s820_s21  ;;  %vm249_vm2 = vcmask 1042432   ;;  %vm251_vm3 = vcmask 1043456   ;;  %vm253_vm4 = vcmask 1044480   ;;  %vm255_vm5 = vcmask 1045504  }
  0x24   : > { %s197_s29 = sld [smem:[#allocation3 + %s196_s26]]  ;;  %s200_s4 = sadd.s32 2, %s820_s21  ;;  %vm257_vm6 = vcmask 1046528   ;;  %v259_v20 = vld [vmem:[#allocation7] sm:$0xff]  ;;  %v323_v44 = vld [vmem:[#allocation7 + $0x8] sm:$0xff] }
  0x25   : > { %s201_s5 = sld [smem:[#allocation3 + %s200_s4]]  ;;  %s204_s30 = sadd.s32 3, %s820_s21 }
  0x26   : > { %s205_s6 = sld [smem:[#allocation3 + %s204_s30]]  ;;  %s208_s7 = sadd.s32 4, %s820_s21 }
  0x27   : > { %s209_s19 = sld [smem:[#allocation3 + %s208_s7]]  ;;  %s212_s8 = sadd.s32 5, %s820_s21 }
  0x28   : > { %s213_s9 = sld [smem:[#allocation3 + %s212_s8]]  ;;  %s216_s10 = sadd.s32 6, %s820_s21 }
  0x29   : > { %s220_s11 = sadd.s32 7, %s820_s21  ;;  %s831_s12 = sld [smem:[#allocation3 + %s216_s10]] }
  0x2a   : > { %s194_s13 = scalar_lea.vmem [#allocation4], %s193_s22  ;;  %s198_s14 = scalar_lea.vmem [#allocation4], %s197_s29 }
  0x2b   : > { %v195_v0 = vld [vmem:[%s194_s13] sm:$0x1]  ;;  %s833_s15 = sld [smem:[#allocation3 + %s220_s11]]  ;;  %s837_s26 = sshll.u32 %s920_s24, 4 }
  0x2c   : > { %v199_v1 = vld [vmem:[%s198_s14] sm:$0x1]  ;;  %s202_s4 = scalar_lea.vmem [#allocation4], %s201_s5  ;;  %s206_s30 = scalar_lea.vmem [#allocation4], %s205_s6 }
  0x2d   : > { %v203_v2 = vld [vmem:[%s202_s4] sm:$0x1]  ;;  %v225_v3 = vrot.slane %v199_v1, 7  ;;  %s210_s7 = scalar_lea.vmem [#allocation4], %s209_s19  ;;  %s842_s29 = sadd.s32 8, %s820_s21 }
  0x2e   : > { %v207_v4 = vld [vmem:[%s206_s30] sm:$0x1]  ;;  %v228_v5 = vrot.slane %v203_v2, 6  ;;  %s214_s22 = scalar_lea.vmem [#allocation4], %s213_s9  ;;  %s846_s5 = sld [smem:[#allocation3 + %s842_s29]] }
  0x2f   : > { %v211_v6 = vld [vmem:[%s210_s7] sm:$0x1]  ;;  %v231_v7 = vrot.slane %v207_v4, 5  ;;  %v246_v8 = vsel %vm245_vm0, %v195_v0, %v225_v3  ;;  %s218_s6 = scalar_lea.vmem [#allocation4], %s831_s12  ;;  %s266_s19 = sadd.s32 1, %s842_s29 }
  0x30   : > { %v215_v9 = vld [vmem:[%s214_s22] sm:$0x1]  ;;  %v234_v10 = vrot.slane %v211_v6, 4  ;;  %v248_v11 = vsel %vm247_vm1, %v246_v8, %v228_v5  ;;  %s267_s9 = sld [smem:[#allocation3 + %s266_s19]]  ;;  %s270_s10 = sadd.s32 2, %s842_s29 }
  0x31   : > { %v237_v12 = vrot.slane %v215_v9, 3  ;;  %v250_v13 = vsel %vm249_vm2, %v248_v11, %v231_v7  ;;  %v219_v14 = vld [vmem:[%s218_s6] sm:$0x1]  ;;  %s222_s8 = scalar_lea.vmem [#allocation4], %s833_s15  ;;  %s271_s11 = sld [smem:[#allocation3 + %s270_s10]] }
  0x32   : > { %v252_v15 = vsel %vm251_vm3, %v250_v13, %v234_v10  ;;  %v223_v16 = vld [vmem:[%s222_s8] sm:$0x1]  ;;  %v240_v17 = vrot.slane %v219_v14, 2  ;;  %s274_s12 = sadd.s32 3, %s842_s29  ;;  %s278_s14 = sadd.s32 4, %s842_s29 }
  0x33   : > { %v254_v18 = vsel %vm253_vm4, %v252_v15, %v237_v12  ;;  %v243_v19 = vrot.slane %v223_v16, 1  ;;  %s275_s13 = sld [smem:[#allocation3 + %s274_s12]]  ;;  %s282_s4 = sadd.s32 5, %s842_s29 }
  0x34   : > { %v256_v21 = vsel %vm255_vm5, %v254_v18, %v240_v17  ;;  %s279_s15 = sld [smem:[#allocation3 + %s278_s14]]  ;;  %s286_s7 = sadd.s32 6, %s842_s29 }
  0x35   : > { %v258_v22 = vsel %vm257_vm6, %v256_v21, %v243_v19  ;;  %s283_s30 = sld [smem:[#allocation3 + %s282_s4]]  ;;  %s290_s22 = sadd.s32 7, %s842_s29 }
  0x36   : > { %v260_v23 = vadd.f32 %v259_v20, %v258_v22  ;;  %s862_s6 = scalar_lea.vmem [#allocation9], %s837_s26  ;;  %s287_s19 = sld [smem:[#allocation3 + %s286_s7]] }
  0x37   : > { %s264_s8 = scalar_lea.vmem [#allocation4], %s846_s5  ;;  %s268_s10 = scalar_lea.vmem [#allocation4], %s267_s9 }
  0x38   : > { %261 = vst [vmem:[%s862_s6] sm:$0xff] %v260_v23  ;;  %v265_v24 = vld [vmem:[%s264_s8] sm:$0x1]  ;;  %s291_s12 = sld [smem:[#allocation3 + %s290_s22]]  ;;  %s272_s24 = scalar_lea.vmem [#allocation4], %s271_s11 }
  0x39   : > { %v269_v25 = vld [vmem:[%s268_s10] sm:$0x1]  ;;  %s276_s14 = scalar_lea.vmem [#allocation4], %s275_s13  ;;  %s341_s9 = scalar_lea.hbm %s919_s3, %s820_s21 }
  0x3a   : > { %v273_v26 = vld [vmem:[%s272_s24] sm:$0x1]  ;;  %v295_v27 = vrot.slane %v269_v25, 7  ;;  %s280_s4 = scalar_lea.vmem [#allocation4], %s279_s15  ;;  %s342_s11 = sshll.u32 %s862_s6, 4  ;;  %s343_s11 = int_to_ptr.vmem [resolvable:$true] %s342_s11 }
  0x3b   : > { %v277_v28 = vld [vmem:[%s276_s14] sm:$0x1]  ;;  %v298_v29 = vrot.slane %v273_v26, 6  ;;  %s284_s26 = scalar_lea.vmem [#allocation4], %s283_s30  ;;  %s876_s15 = sshll.u32 %s341_s9, 4  ;;  %s345_s15 = int_to_ptr.hbm [resolvable:$true] %s876_s15 }
  0x3c   : > { %v281_v30 = vld [vmem:[%s280_s4] sm:$0x1]  ;;  %v301_v31 = vrot.slane %v277_v28, 5  ;;  %v315_v32 = vsel %vm245_vm0, %v265_v24, %v295_v27  ;;  %s288_s24 = scalar_lea.vmem [#allocation4], %s287_s19  ;;  %s925_s21 = sand.u32 1, %s688_s17  }
  0x3d   : > { %v285_v33 = vld [vmem:[%s284_s26] sm:$0x1]  ;;  %v304_v34 = vrot.slane %v281_v30, 4  ;;  %v316_v35 = vsel %vm247_vm1, %v315_v32, %v298_v29  ;;  %s328_s30 = scalar_lea.sflag [#allocation6], %s925_s21  ;;  %s630_s7 = sshra.s32 %s345_s15, 4  ;;  %s631_s7 = int_to_ptr.hbm [resolvable:$true] %s630_s7 }
  0x3e   : > { %v307_v36 = vrot.slane %v285_v33, 3  ;;  %v317_v37 = vsel %vm249_vm2, %v316_v35, %v301_v31  ;;  %v289_v38 = vld [vmem:[%s288_s24] sm:$0x1]  ;;  %s292_s13 = scalar_lea.vmem [#allocation4], %s291_s12  ;;  %s632_s22 = scalar_lea.hbm %s631_s7, 16 }
  0x3f   : > { %v318_v39 = vsel %vm251_vm3, %v317_v37, %v304_v34  ;;  %v293_v40 = vld [vmem:[%s292_s13] sm:$0x1]  ;;  %v310_v41 = vrot.slane %v289_v38, 2  ;;  %p633_p0 = scmp.ne.s32.totalorder %s631_s7, %s632_s22  ;;  %s636_s10 = scalar_lea.hbm %s919_s3, 32 }
  0x40   : > { %v319_v42 = vsel %vm253_vm4, %v318_v39, %v307_v36  ;;  %v313_v43 = vrot.slane %v293_v40, 1  ;;  %p637_p3 = scmp.lt.s32.totalorder %s631_s7, %s919_s3  ;;  %p638_p5 = scmp.lt.s32.totalorder %s636_s10, %s632_s22 }
  0x41   : > { %v320_v45 = vsel %vm255_vm5, %v319_v42, %v310_v41  ;;  %p634_p1 = pnand %p633_p0, %p776_p4 }
  0x42   : > { %v321_v46 = vsel %vm257_vm6, %v320_v45, %v313_v43  ;;  %p639_p6 = por %p638_p5, %p637_p3 }
  0x43   : > { %v324_v47 = vadd.f32 %v323_v44, %v321_v46  ;;  %p635_p2 = pneg %p634_p1 }
  0x45   : > { %456 = vst [vmem:[%s862_s6 + $0x8] sm:$0xff] %v324_v47  ;;  %p640_p7 = pnand %p639_p6, %p635_p2 }
  0x47   : > { %643 = shalt.err (!%p640_p7)
}
  0x48   : > { %s711_s6 = smov 128   ;;  %s712_s4 = smov 8  }
  0x49   : > { %471 = dma.vmem_to_hbm [thread:$0]  (%p776_p4), %s343_s11, 256, %s345_s15, %s328_s30, %s711_s6, %s711_s6, %s712_s4  }
  0x4a PF: > { %p488_p9 = scmp.ge.s32.totalorder %s704_s0, 2  ;;  %s359_s26 = sand.u32 1, %s684_s16  }
  0x4b   : > { %s360_s29 = scalar_lea.sflag [#allocation6], %s359_s26 }
  0x4c   : > { %p481_p10 = pnand %p488_p9, %p783_p8 }
  0x4e   : > { %p482_p11 = pneg %p481_p10 }
  0x50   : > { %679 = dma.done.wait (%p482_p11), %s360_s29, 256  }
  0x51   : > { %681 = vsyncadd (%p482_p11), %s360_s29, 4294967040  ;;  %s26_s0 = sadd.s32 1, %s704_s0   ;;  %s926_s16 = smov %s688_s17 }
  0x52   : > { %p23_p12 = scmp.ge.s32.totalorder %s26_s0, 4   ;;  %s927_s17 = smov %s692_s18 }
  0x53   : > { %s928_s18 = smov %s789_s28  ;;  %s929_s19 = smov %s700_s20 }
  0x54   : > { %s930_s20 = smov %s932_s23  ;;  %25 = sbr.rel (!%p23_p12) target bundleno = 12 (0xc), region = 88 }
  0x59   :  { %366 = vsyncpa [#allocation5], 1 }
  0x5a   :  { %368 = vsyncpa [#allocation5 + $0x1], 1 }
  0x5b   :  { %369 = vsyncpa [#allocation8], 1 }
  0x5c   :  { %370 = vsyncpa [#allocation6], 1 }
  0x5d   :  { %372 = vsyncpa [#allocation6 + $0x1], 1 }

</bundles_post_ra>
